<compile_context>
chip_gen: v7x
topology: tpu7x:2x2x1
jax: 0.10.0
libtpu: 0.0.40
codegen_flags: <defaults>
</compile_context>

<pallas_src>
import functools

import jax
import jax.numpy as jnp
from jax.experimental import pallas as pl
from jax.experimental.pallas import tpu as pltpu

EPS = 1e-6          # bn099_kwargs['eps']
NEG_SLOPE = 0.2     # lrelu02_kwargs['negative_slope']
LANE = 128          # every channel width is padded to a multiple of this


def _ceil_to(v, m):
    return ((v + m - 1) // m) * m


def _lrelu(x):
    return jnp.where(x > 0, x, NEG_SLOPE * x)


# ------------------------------- kernels ----------------------------------

def stem_kernel(x_ref, w_ref, sc_ref, h1_ref):
    """Fused `shortcut` (Linear+BN) and `mlp1` (Linear+BN+LeakyReLU); BN folded.

    One MXU dot against the column-concatenated [W_shortcut | W_mlp1] slab; the
    split happens at a 128-lane boundary so both stores stay lane-dense."""
    x = x_ref[...]
    cin = x.shape[1]
    w = w_ref[...]                                # (cin+1, d_sc + d_h1); last row = bias
    y = jnp.dot(x, w[:cin, :], preferred_element_type=jnp.float32) + w[cin:, :]
    d_sc = sc_ref.shape[1]
    sc_ref[...] = y[:, :d_sc].astype(sc_ref.dtype)
    h1_ref[...] = _lrelu(y[:, d_sc:]).astype(h1_ref.dtype)


def lfa_kernel(pos_c_ref, pos_j_ref, xj_ref, enc_ref, att_ref, post_ref, *rest,
               fuse_tail, k_real):
    """LocalFeatureAggregation: locSE + attentive pooling + add-aggregate + post MLP.

    If fuse_tail: also applies mlp2 (Linear + folded BN), the residual add with
    the shortcut tile and the block's final LeakyReLU (DilatedResidualBlock tail)."""
    if fuse_tail:
        sc_ref, w2_ref, o_ref = rest
    else:
        (o_ref,) = rest

    pos_c = pos_c_ref[...]                        # (TM, 3)     centroid positions
    pos_j = pos_j_ref[...]                        # (TM, K, 3)  neighbor positions
    xj = xj_ref[...]                              # (TM, K, CH) neighbor features (x_j)
    tm, k, chp = xj.shape
    c2 = 2 * chp

    # ---- local spatial encoding (diff weights pre-folded into pos_i / pos_j) ----
    # enc = pos_i@(W_pi - W_pd) + pos_j@(W_pj + W_pd) + dist*w_dist + bias
    ew = enc_ref[...]                             # (8, CH): w_pi' | w_pj' | w_dist | b
    pi = (pos_c[:, 0:1] * ew[0:1, :] + pos_c[:, 1:2] * ew[1:2, :]
          + pos_c[:, 2:3] * ew[2:3, :] + ew[7:8, :])              # (TM, CH) K-invariant
    pj = (pos_j[..., 0:1] * ew[3:4, :] + pos_j[..., 1:2] * ew[4:5, :]
          + pos_j[..., 2:3] * ew[5:6, :])                         # (TM, K, CH)
    diff = pos_j - pos_c[:, None, :]
    dist = jnp.sqrt(jnp.sum(diff * diff, axis=-1, keepdims=True))  # (TM, K, 1)
    enc = _lrelu(pi[:, None, :] + pj + dist * ew[6:7, :])          # (TM, K, CH)

    # ---- attentive pooling: one MXU dot on loc = cat([x_j, enc]) (bias=False) ----
    loc = jnp.concatenate([xj, enc], axis=-1)                      # (TM, K, 2CH)
    aw = att_ref[...]                                              # (2CH, 2CH)
    att = jnp.dot(loc.reshape(tm * k, c2), aw,
                  preferred_element_type=jnp.float32).reshape(tm, k, c2)
    if k_real != k:                               # mask padded neighbors
        kid = jax.lax.broadcasted_iota(jnp.int32, (tm, k, 1), 1)
        att = jnp.where(kid < k_real, att, -jnp.inf)
    # scatter-softmax over the K edges of each centroid (per channel)
    att = jnp.exp(att - jnp.max(att, axis=1, keepdims=True))
    att = att * pl.reciprocal(jnp.sum(att, axis=1, keepdims=True), approx=True)
    # message = att * loc ; aggr='add' over neighbors
    out = jnp.sum(att * loc, axis=1)                               # (TM, 2CH)

    # ---- mlp_post_attention: Linear (+ folded BN) + LeakyReLU, single MXU dot ----
    pw = post_ref[...]                                             # (2CH+1, OUT)
    y = _lrelu(jnp.dot(out, pw[:c2, :], preferred_element_type=jnp.float32)
               + pw[c2:, :])

    if fuse_tail:
        # ---- mlp2 (Linear + folded BN) + residual + final LeakyReLU ----
        w2 = w2_ref[...]                                           # (OUT+1, D_OUT)
        outp = y.shape[1]
        y2 = jnp.dot(y, w2[:outp, :], preferred_element_type=jnp.float32) + w2[outp:, :]
        o_ref[...] = _lrelu(y2 + sc_ref[...]).astype(o_ref.dtype)
    else:
        o_ref[...] = y.astype(o_ref.dtype)


# --------------------------- pallas_call wrappers --------------------------

def _full(shape):
    nd = len(shape)
    return pl.BlockSpec(shape, lambda i, _nd=nd: (0,) * _nd)


def stem(x, w_slab, d_sc, *, tm):
    n, cin = x.shape
    d_h1 = w_slab.shape[1] - d_sc
    cost = pl.CostEstimate(
        flops=int(2 * n * cin * (d_sc + d_h1)),
        transcendentals=0,
        bytes_accessed=int(4 * (n * cin + n * (d_sc + d_h1) + w_slab.size)))
    return pl.pallas_call(
        stem_kernel,
        out_shape=(jax.ShapeDtypeStruct((n, d_sc), x.dtype),
                   jax.ShapeDtypeStruct((n, d_h1), x.dtype)),
        grid_spec=pltpu.PrefetchScalarGridSpec(
            num_scalar_prefetch=0, grid=(n // tm,),
            in_specs=[pl.BlockSpec((tm, cin), lambda i: (i, 0)),
                      _full(w_slab.shape)],
            out_specs=(pl.BlockSpec((tm, d_sc), lambda i: (i, 0)),
                       pl.BlockSpec((tm, d_h1), lambda i: (i, 0)))),
        compiler_params=pltpu.CompilerParams(dimension_semantics=("parallel",)),
        cost_estimate=cost,
    )(x, w_slab)


def local_feature_aggregation(pos, nbr_idx, x_half, slabs, *, tm,
                              shortcut=None, mlp2_slab=None):
    n, k_real = nbr_idx.shape
    chp = x_half.shape[1]
    fuse_tail = shortcut is not None
    d_o = mlp2_slab.shape[1] if fuse_tail else slabs['post'].shape[1]

    # Pad K to a multiple of 8 (full sublane groups); padded edges masked in-kernel.
    k = _ceil_to(k_real, 8)
    if k != k_real:
        nbr_idx = jnp.pad(nbr_idx, ((0, 0), (0, k - k_real)))

    # Neighbor gather is plain-JAX glue at these sizes (graph construction).
    # TODO(synk): at production N, pass nbr_idx via scalar prefetch and gather rows
    # in-kernel from resident pos/x_half (pl.ANY + DMA) to remove the K-fold HBM
    # amplification of these tensors.
    pos_j = jnp.take(pos, nbr_idx, axis=0)     # (n, k, 3)
    x_j = jnp.take(x_half, nbr_idx, axis=0)    # (n, k, chp)

    in_specs = [pl.BlockSpec((tm, 3), lambda i: (i, 0)),
                pl.BlockSpec((tm, k, 3), lambda i: (i, 0, 0)),
                pl.BlockSpec((tm, k, chp), lambda i: (i, 0, 0)),
                _full(slabs['enc'].shape), _full(slabs['att'].shape),
                _full(slabs['post'].shape)]
    args = [pos, pos_j, x_j, slabs['enc'], slabs['att'], slabs['post']]
    if fuse_tail:
        in_specs += [pl.BlockSpec((tm, d_o), lambda i: (i, 0)),
                     _full(mlp2_slab.shape)]
        args += [shortcut, mlp2_slab]

    c2 = 2 * chp
    flops = 2 * n * k * c2 * c2 + 2 * n * c2 * slabs['post'].shape[1] + 10 * n * k * chp
    if fuse_tail:
        flops += 2 * n * slabs['post'].shape[1] * d_o
    cost = pl.CostEstimate(
        flops=int(flops),
        transcendentals=int(n * k * (c2 + 1) + n * c2),
        bytes_accessed=int(4 * (n * k * (chp + 3) + n * 3 + n * d_o
                                + slabs['enc'].size + slabs['att'].size
                                + slabs['post'].size
                                + (shortcut.size + mlp2_slab.size if fuse_tail else 0))))

    return pl.pallas_call(
        functools.partial(lfa_kernel, fuse_tail=fuse_tail, k_real=k_real),
        out_shape=jax.ShapeDtypeStruct((n, d_o), x_half.dtype),
        grid_spec=pltpu.PrefetchScalarGridSpec(
            num_scalar_prefetch=0, grid=(n // tm,),
            in_specs=in_specs,
            out_specs=pl.BlockSpec((tm, d_o), lambda i: (i, 0))),
        compiler_params=pltpu.CompilerParams(dimension_semantics=("parallel",)),
        cost_estimate=cost,
    )(*args)


# ------------------------- host-side param folding -------------------------

def _bn_scale_shift(bn):
    gamma, beta, mean, var = bn[0], bn[1], bn[2], bn[3]
    s = gamma / jnp.sqrt(var + EPS)
    return s, beta - mean * s


def _fold_linear_bn(w, b, bn):
    s, t = _bn_scale_shift(bn)
    return w * s[None, :], b * s[None, :] + t[None, :]


def _pad_cols(w, cols):
    pad = cols - w.shape[1]
    return jnp.pad(w, ((0, 0), (0, pad))) if pad else w


def _fold_lfa(p, chp, outp):
    """Pack one LocalFeatureAggregation into three lane-padded slabs.

    Real channels live in columns [0:ch] of each chp-wide half; padded channels get
    zero weights and zero bias everywhere, so they stay exactly zero end-to-end."""
    ch = p['we_pi'].shape[1]
    s, t = _bn_scale_shift(p['bn_enc'])
    # diff = pos_j - pos_i  =>  fold W_pd into the pos_i / pos_j weights (host-side).
    w_pi = (p['we_pi'] - p['we_pd']) * s[None, :]
    w_pj = (p['we_pj'] + p['we_pd']) * s[None, :]
    w_d = p['we_dist'] * s[None, :]
    b_e = p['be'] * s[None, :] + t[None, :]
    enc = _pad_cols(jnp.concatenate([w_pi, w_pj, w_d, b_e], 0), chp)        # (8, chp)

    # mlp_attention (bias=False): embed the real (2ch,2ch) matrix into (2chp,2chp)
    # so its output columns line up channel-wise with loc = [x(chp) | enc(chp)].
    att = jnp.zeros((2 * chp, 2 * chp), jnp.float32)
    att = att.at[0:ch, 0:ch].set(p['wa_x'][:, :ch])
    att = att.at[0:ch, chp:chp + ch].set(p['wa_x'][:, ch:])
    att = att.at[chp:chp + ch, 0:ch].set(p['wa_e'][:, :ch])
    att = att.at[chp:chp + ch, chp:chp + ch].set(p['wa_e'][:, ch:])

    # mlp_post_attention: Linear + folded BN; bias packed as the last row.
    wp = jnp.concatenate([p['wp_x'], p['wp_e']], 0)
    wp_f, bp_f = _fold_linear_bn(wp, p['bp'], p['bn_post'])
    post = jnp.zeros((2 * chp + 1, outp), jnp.float32)
    post = post.at[0:ch, 0:2 * ch].set(wp_f[:ch])
    post = post.at[chp:chp + ch, 0:2 * ch].set(wp_f[ch:])
    post = post.at[2 * chp:, 0:2 * ch].set(bp_f)
    return {'enc': enc, 'att': att, 'post': post}


def fold_params(params, d_out):
    """Fold inference BN into the Linears, fold the diff encoder weights, and pack
    everything into lane-dense (multiple-of-128 column) weight slabs."""
    d_out_p = _ceil_to(d_out, LANE)
    chp1 = _ceil_to(d_out // 8, LANE)     # lfa1 half-width (mlp1 output width)
    chp2 = _ceil_to(d_out // 4, LANE)     # lfa2 half-width (lfa1 output width)
    mid_p = _ceil_to(d_out // 2, LANE)    # lfa2 output width (mlp2 input width)

    w_sc, b_sc = _fold_linear_bn(*params['shortcut'])
    w_m1, b_m1 = _fold_linear_bn(*params['mlp1'])
    stem_w = jnp.concatenate(
        [jnp.concatenate([_pad_cols(w_sc, d_out_p), _pad_cols(w_m1, chp1)], 1),
         jnp.concatenate([_pad_cols(b_sc, d_out_p), _pad_cols(b_m1, chp1)], 1)], 0)

    w_2, b_2 = _fold_linear_bn(*params['mlp2'])            # (d_out//2, d_out)
    mlp2 = jnp.zeros((mid_p + 1, d_out_p), jnp.float32)
    mlp2 = mlp2.at[0:d_out // 2, 0:d_out].set(w_2)
    mlp2 = mlp2.at[mid_p:, 0:d_out].set(b_2)

    return {'stem': stem_w, 'd_sc': d_out_p, 'mlp2': mlp2,
            'lfa1': _fold_lfa(params['lfa1'], chp1, chp2),
            'lfa2': _fold_lfa(params['lfa2'], chp2, mid_p)}


# ------------------------------ block driver -------------------------------

def knn_graph_dense(pos, batch, k):
    # knn_graph(pos, k, batch, loop=True): per-point k nearest neighbors within the
    # same batch segment, self included. Plain-JAX glue (graph construction).
    # TODO(synk): O(N^2) distance matrix; replace with bucketed KNN at production N.
    d2 = jnp.sum((pos[:, None, :] - pos[None, :, :]) ** 2, axis=-1)
    same = batch[:, None] == batch[None, :]
    d2 = jnp.where(same, d2, jnp.inf)
    _, idx = jax.lax.top_k(-d2, k)
    return idx                                       # (N, k)


def dilated_residual_block(x, pos, batch, params, num_neighbors, tm):
    n = x.shape[0]
    d_out = params['shortcut'][0].shape[1]
    folded = fold_params(params, d_out)
    nbr = knn_graph_dense(pos, batch, num_neighbors)

    # Pad the point axis so the grid covers every point (tail is sliced off).
    n_pad = pl.cdiv(n, tm) * tm
    pad = n_pad - n
    xp = jnp.pad(x, ((0, pad), (0, 0))) if pad else x
    posp = jnp.pad(pos, ((0, pad), (0, 0))) if pad else pos
    nbrp = jnp.pad(nbr, ((0, pad), (0, 0))) if pad else nbr

    # TODO(synk): at production sizes raise TM (v6e ~512-1024, v7x roughly half due
    # to 64 MiB VMEM), set CompilerParams(vmem_limit_bytes=...) explicitly, and cast
    # the (TM,K,*) tiles + weight slabs to bf16 for DMA/MXU (f32 accumulation kept).
    shortcut, h = stem(xp, folded['stem'], folded['d_sc'], tm=tm)
    h = local_feature_aggregation(posp, nbrp, h, folded['lfa1'], tm=tm)
    out = local_feature_aggregation(posp, nbrp, h, folded['lfa2'], tm=tm,
                                    shortcut=shortcut, mlp2_slab=folded['mlp2'])
    return out[:n, :d_out], pos, batch


# ----------------------- deterministic parameter init ----------------------

def init_linear(key, cin, cout):
    kw, kb = jax.random.split(key)
    w = (1.0 / (cin ** 0.5)) * jax.random.normal(kw, (cin, cout), jnp.float32)
    b = 0.1 * jax.random.normal(kb, (1, cout), jnp.float32)
    return w, b


def init_bn(key, c):
    kg, kb, km, kv = jax.random.split(key, 4)
    gamma = 1.0 + 0.1 * jax.random.normal(kg, (c,), jnp.float32)
    beta = 0.1 * jax.random.normal(kb, (c,), jnp.float32)
    mean = 0.1 * jax.random.normal(km, (c,), jnp.float32)
    var = 1.0 + 0.1 * jax.random.uniform(kv, (c,), jnp.float32)
    return jnp.stack([gamma, beta, mean, var], axis=0)   # (4, c)


def init_linear_bn(key, cin, cout):
    k1, k2 = jax.random.split(key)
    w, b = init_linear(k1, cin, cout)
    return (w, b, init_bn(k2, cout))


def init_lfa(key, channels):
    ch = channels // 2
    k1, k2, k3, k4, k5 = jax.random.split(key, 5)
    w_enc, b_enc = init_linear(k1, 10, ch)           # mlp_encoder: [10 -> ch]
    bn_enc = init_bn(k2, ch)
    w_att, _ = init_linear(k3, channels, channels)   # mlp_attention: bias=False
    w_post, b_post = init_linear(k4, channels, channels)
    bn_post = init_bn(k5, channels)
    return dict(
        we_pi=w_enc[0:3], we_pj=w_enc[3:6], we_pd=w_enc[6:9], we_dist=w_enc[9:10],
        be=b_enc, bn_enc=bn_enc,
        wa_x=w_att[:ch], wa_e=w_att[ch:],
        wp_x=w_post[:ch], wp_e=w_post[ch:], bp=b_post, bn_post=bn_post)


# ----------------------------- pure-JAX reference --------------------------

def _ref_mlp(x, w, b, bn, act):
    g, be, m, v = bn
    y = (x @ w + b - m) / jnp.sqrt(v + EPS) * g + be
    return jnp.where(y > 0, y, NEG_SLOPE * y) if act else y


def _ref_lfa(pos, nbr, xh, p):
    n, k = nbr.shape
    pos_i = jnp.broadcast_to(pos[:, None, :], (n, k, 3))
    pos_j, x_j = pos[nbr], xh[nbr]
    diff = pos_j - pos_i
    dist = jnp.sqrt(jnp.sum(diff ** 2, -1, keepdims=True))
    rel = jnp.concatenate([pos_i, pos_j, diff, dist], -1)
    w_enc = jnp.concatenate([p['we_pi'], p['we_pj'], p['we_pd'], p['we_dist']], 0)
    enc = _ref_mlp(rel, w_enc, p['be'], p['bn_enc'], True)
    loc = jnp.concatenate([x_j, enc], -1)
    att = jax.nn.softmax(loc @ jnp.concatenate([p['wa_x'], p['wa_e']], 0), axis=1)
    out = jnp.sum(att * loc, axis=1)
    return _ref_mlp(out, jnp.concatenate([p['wp_x'], p['wp_e']], 0), p['bp'],
                    p['bn_post'], True)


def _ref_block(x, pos, batch, params, k):
    nbr = knn_graph_dense(pos, batch, k)
    sc = _ref_mlp(x, *params['shortcut'], False)
    h = _ref_mlp(x, *params['mlp1'], True)
    h = _ref_lfa(pos, nbr, h, params['lfa1'])
    h = _ref_lfa(pos, nbr, h, params['lfa2'])
    y = _ref_mlp(h, *params['mlp2'], False) + sc
    return jnp.where(y > 0, y, NEG_SLOPE * y)


# ---------------------------------- main -----------------------------------

if __name__ == "__main__":
    key = jax.random.PRNGKey(0)
    N, K = 64, 8            # points, num_neighbors
    d_in, d_out = 8, 32
    TM = 32                 # point-tile size (grid has 2 steps -> both v7x TCs busy)

    k_x, k_pos, k_p = jax.random.split(key, 3)
    x = jax.random.normal(k_x, (N, d_in), jnp.float32)
    pos = jax.random.normal(k_pos, (N, 3), jnp.float32)
    batch = jnp.repeat(jnp.arange(2, dtype=jnp.int32), N // 2)

    kp = jax.random.split(k_p, 5)
    params = {
        'mlp1': init_linear_bn(kp[0], d_in, d_out // 8),
        'shortcut': init_linear_bn(kp[1], d_in, d_out),
        'mlp2': init_linear_bn(kp[2], d_out // 2, d_out),
        'lfa1': init_lfa(kp[3], d_out // 4),
        'lfa2': init_lfa(kp[4], d_out // 2),
    }

    out, pos_out, batch_out = dilated_residual_block(x, pos, batch, params, K, TM)
    jax.block_until_ready(out)
    assert out.shape == (N, d_out) and out.dtype == jnp.float32

    ref = _ref_block(x, pos, batch, params, K)
    # tolerance covers MXU precision, folded-BN algebra and approx reciprocal
    err = float(jnp.max(jnp.abs(out - ref)))
    assert jnp.allclose(out, ref, rtol=2e-2, atol=2e-2), err

    print("KERNEL_OK")
</pallas_src>

<mosaic_0001>
module attributes {stable_mosaic.version = 11 : i64} {
  func.func @stem_kernel(%arg0: i32, %arg1: memref<32x8xf32, #tpu.memory_space<vmem>>, %arg2: memref<9x256xf32, #tpu.memory_space<vmem>>, %arg3: memref<32x128xf32, #tpu.memory_space<vmem>>, %arg4: memref<32x128xf32, #tpu.memory_space<vmem>>) attributes {dimension_semantics = [#tpu.dimension_semantics<parallel>], iteration_bounds = array<i64: 2>, scalar_prefetch = 0 : i64, scratch_operands = 0 : i64, tpu.core_type = #tpu.core_type<tc>, window_params = [{transform_indices = @transform_0, window_bounds = array<i64: 32, 8>}, {pipeline_mode = #tpu.pipeline_mode<synchronous>, transform_indices = @transform_1, window_bounds = array<i64: 9, 256>}, {transform_indices = @transform_2, window_bounds = array<i64: 32, 128>}, {transform_indices = @transform_3, window_bounds = array<i64: 32, 128>}]} {
    %c0 = arith.constant 0 : index
    %c0_0 = arith.constant 0 : index
    %0 = vector.load %arg1[%c0, %c0_0] : memref<32x8xf32, #tpu.memory_space<vmem>>, vector<32x8xf32>
    %c0_1 = arith.constant 0 : index
    %c0_2 = arith.constant 0 : index
    %1 = vector.load %arg2[%c0_1, %c0_2] : memref<9x256xf32, #tpu.memory_space<vmem>>, vector<9x256xf32>
    %2 = vector.extract_strided_slice %1 {offsets = [0, 0], sizes = [8, 256], strides = [1, 1]} : vector<9x256xf32> to vector<8x256xf32>
    %cst = arith.constant dense<0.000000e+00> : vector<32x256xf32>
    %3 = tpu.matmul %0, %2, %cst {dimension_numbers = #tpu.dot_dimension_numbers<[1], [0], [0], [1], [0, 0, 1, 1], [], []>} : vector<32x8xf32>, vector<8x256xf32>, vector<32x256xf32> -> vector<32x256xf32>
    %4 = vector.extract_strided_slice %1 {offsets = [8, 0], sizes = [1, 256], strides = [1, 1]} : vector<9x256xf32> to vector<1x256xf32>
    %5 = vector.broadcast %4 : vector<1x256xf32> to vector<32x256xf32>
    %6 = arith.addf %3, %5 : vector<32x256xf32>
    %7 = vector.extract_strided_slice %6 {offsets = [0, 0], sizes = [32, 128], strides = [1, 1]} : vector<32x256xf32> to vector<32x128xf32>
    %c0_3 = arith.constant 0 : index
    %c0_4 = arith.constant 0 : index
    %8 = vector.load %arg3[%c0_3, %c0_4] : memref<32x128xf32, #tpu.memory_space<vmem>>, vector<32x128xf32>
    tpu.vector_store %arg3[%c0_3, %c0_4], %7 {strides = array<i32>} : memref<32x128xf32, #tpu.memory_space<vmem>>, vector<32x128xf32>,
    %9 = vector.extract_strided_slice %6 {offsets = [0, 128], sizes = [32, 128], strides = [1, 1]} : vector<32x256xf32> to vector<32x128xf32>
    %cst_5 = arith.constant 0.000000e+00 : f32
    %10 = vector.broadcast %cst_5 : f32 to vector<32x128xf32>
    %11 = arith.cmpf ogt, %9, %10 : vector<32x128xf32>
    %cst_6 = arith.constant 2.000000e-01 : f32
    %12 = vector.broadcast %cst_6 : f32 to vector<32x128xf32>
    %13 = arith.mulf %12, %9 : vector<32x128xf32>
    %14 = arith.select %11, %9, %13 : vector<32x128xi1>, vector<32x128xf32>
    %c0_7 = arith.constant 0 : index
    %c0_8 = arith.constant 0 : index
    %15 = vector.load %arg4[%c0_7, %c0_8] : memref<32x128xf32, #tpu.memory_space<vmem>>, vector<32x128xf32>
    tpu.vector_store %arg4[%c0_7, %c0_8], %14 {strides = array<i32>} : memref<32x128xf32, #tpu.memory_space<vmem>>, vector<32x128xf32>,
    return
  }
  func.func @transform_0(%arg0: i32) -> (i32, i32) {
    %c0_i32 = arith.constant 0 : i32
    %c0_i32_0 = arith.constant 0 : i32
    return %arg0, %c0_i32 : i32, i32
  }
  func.func @transform_1(%arg0: i32) -> (i32, i32) {
    %c0_i32 = arith.constant 0 : i32
    %c0_i32_0 = arith.constant 0 : i32
    %c0_i32_1 = arith.constant 0 : i32
    return %c0_i32, %c0_i32_0 : i32, i32
  }
  func.func @transform_2(%arg0: i32) -> (i32, i32) {
    %c0_i32 = arith.constant 0 : i32
    %c0_i32_0 = arith.constant 0 : i32
    return %arg0, %c0_i32 : i32, i32
  }
  func.func @transform_3(%arg0: i32) -> (i32, i32) {
    %c0_i32 = arith.constant 0 : i32
    %c0_i32_0 = arith.constant 0 : i32
    return %arg0, %c0_i32 : i32, i32
  }
}

</mosaic_0001>

<bundles_post_ra>
// kernel: tpu_custom_call.1
= control target key start
LH: loop header
LB: loop body
LE: loop exit
PB: predicated region body
PF: predicated region fallthrough
CT: control target
= control target key end

     0   :  { %9 = vsyncpa [#allocation3], 0  ;;  %s808_s0 = inlined_call_operand.vmem [shape: f32[64,8], index: 0, kind: input, shape index: {}]   ;;  %s809_s1 = inlined_call_operand.vmem [shape: f32[9,256], index: 1, kind: input, shape index: {}]   ;;  %s810_s2 = inlined_call_operand.hbm [shape: f32[64,128], index: 2, kind: output, shape index: {0}]   ;;  %s811_s3 = inlined_call_operand.hbm [shape: f32[64,128], index: 3, kind: output, shape index: {1}]  }
   0x1   :  { %11 = vsyncpa [#allocation3 + $0x1], 0 }
   0x2   :  { %12 = vsyncpa [#allocation5], 0 }
   0x3   :  { %14 = vsyncpa [#allocation5 + $0x1], 0  ;;  %s645_s12 = smov 0   ;;  %s647_s13 = smov 0  }
   0x4   :  { %s649_s14 = smov 0   ;;  %s651_s15 = smov 0  }
   0x5 LB: > { %s666_s16 = sadd.s32 4294967295, %s618_s15   ;;  %s451_s17 = sadd.s32 4294967294, %s618_s15   ;;  %s618_s15 = sphi %s651_s15, %s817_s15   ;;  %s614_s14 = sphi %s649_s14, %s816_s14   ;;  %s610_s13 = sphi %s647_s13, %s815_s13   ;;  %s606_s12 = sphi %s645_s12, %s814_s12  }
   0x6   : > { %s670_s18 = sadd.s32 1, %s618_s15   ;;  %s74_s19 = sadd.s32 1, %s614_s14 }
   0x7   : > { %s71_s20 = ssub.s32 %s618_s15, %s670_s18  ;;  %p84_p0 = scmp.ne.s32.totalorder %s614_s14, %s610_s13 }
   0x8   : > { %p72_p1 = scmp.eq.s32.totalorder %s71_s20, 0  ;;  %p85_p2 = scmp.eq.s32.totalorder %s666_s16, 1 }
   0x9   : > { %p90_p3 = scmp.ne.s32.totalorder %s610_s13, %s606_s12  ;;  %p91_p4 = scmp.eq.s32.totalorder %s451_s17, 1 }
   0xa   : > { %s681_s21 = scalar_select %p72_p1, %s614_s14, %s74_s19  }
   0xb   : > { %p683_p5 = por %p85_p2, %p84_p0  ;;  %p687_p6 = por %p91_p4, %p90_p3 }
   0xc   : > { %p454_p7 = scmp.ge.s32.totalorder %s618_s15, 1  ;;  %p147_p8 = scmp.lt.s32.totalorder %s618_s15, 3 }
   0xe   : > { %p148_p9 = pnand %p454_p7, %p147_p8 }
   0xf   : > { %v189_v0 = vld [vmem:[%s809_s1 + $0x8] sm:$0xff] (!%p148_p9)  ;;  %v188_v1 = vld [vmem:[%s809_s1] sm:$0xff] (!%p148_p9)  ;;  %s457_s28 = sshll.u32 (!%p148_p9), %s666_s16, 2  ;;  %v620_v2 = vmov (!%p148_p9), 0.0   ;;  %vm200_vm0 = vcmask (!%p148_p9), 64512   ;;  %s704_s6 = sand.u32 (!%p148_p9), 1, %s610_s13  }
  0x10   : > { %151 = sbr.rel (%p148_p9) target bundleno = 285 (0x11d), region = 28  ;;  %213 = vmatprep.subr.mxu0 (!%p148_p9), %v189_v0  ;;  %475 = vmatprep.subr.mxu1 (!%p148_p9), %v189_v0  ;;  %p177_p10 = scmp.lt.s32.totalorder (!%p148_p9), %s457_s28, 7  ;;  %v459_v7 = vld [vmem:[%s809_s1 + $0x10] ss:$0 sm:$0xff] (!%p148_p9)  ;;  %v460_v8 = vld [vmem:[%s809_s1 + $0x18] ss:$0 sm:$0xff] (!%p148_p9) }
  0x11   : > { %214 = vmatpush1.msra.mxu0 (!%p148_p9), %v188_v1  ;;  %476 = vmatpush1.msra.mxu1 (!%p148_p9), %v188_v1  ;;  %s455_s7 = sshll.u32 (!%p148_p9), %s704_s6, 5  ;;  %s473_s20 = sshll.u32 (!%p148_p9), %s666_s16, 9 }
  0x12   : > { %277 = vmatprep.mubr.f32.mxu0 (!%p148_p9), %v620_v2  ;;  %289 = vmatprep.mubr.f32.mxu1 (!%p148_p9), %v620_v2  ;;  %s168_s17 = scalar_lea.vmem (!%p148_p9), [#allocation2], %s455_s7  ;;  %s714_s24 = scalar_lea.vmem (!%p148_p9), [#allocation4], %s455_s7 }
  0x13   : > { %s341_s19 = sshll.u32 (!%p148_p9), %s168_s17, 4  ;;  %s357_s25 = sshll.u32 (!%p148_p9), %s714_s24, 4  ;;  %s717_s19 = int_to_ptr.vmem [resolvable:$true] %s341_s19  ;;  %s726_s25 = int_to_ptr.vmem [resolvable:$true] %s357_s25 }
  0x14   : > { %s722_s27 = scalar_lea.hbm (!%p148_p9), %s810_s2, %s473_s20  ;;  %s731_s30 = scalar_lea.hbm (!%p148_p9), %s811_s3, %s473_s20 }
  0x15   : > { %s323_s4 = scalar_lea.sflag (!%p148_p9), [#allocation3], %s704_s6  ;;  %s621_s7 = smov (!%p148_p9), [#allocation2]  }
  0x16   : > { %s528_s8 = sshll.u32 (!%p148_p9), %s621_s7, 4  ;;  %s529_s8 = int_to_ptr.vmem [resolvable:$false] %s528_s8 }
  0x17   : > { %s819_s28 = smov (!%p177_p10, %s457_s28), 7  ;;  %s530_s9 = scalar_lea.vmem %s529_s8, 1024 }
  0x18   : > { %s458_s29 = sshll.u32 %s819_s28, 3  ;;  %p531_p0 = scmp.lt.s32.totalorder %s717_s19, %s529_s8 }
  0x19   : > { %s180_s5 = scalar_lea.vmem %s808_s0, %s458_s29 }
  0x1a   : > { %v184_v3 = vld [vmem:[%s180_s5] sm:$0xff]  ;;  %v186_v4 = vld [vmem:[%s180_s5 + $0x10] sm:$0xff]  ;;  %v185_v5 = vld [vmem:[%s180_s5 + $0x8] sm:$0xff] }
  0x1b   : > { %461 = vmatmul.mubr.msk.f32.vlgmr.msra.gmra.mrb[0].mxu0 %vm200_vm0, %v184_v3  ;;  %463 = vmatmul.mubr.msk.f32.vlgmr.msra.gmra.mrb[0].mxu1 %vm200_vm0, %v186_v4  ;;  %v187_v6 = vld [vmem:[%s180_s5 + $0x18] sm:$0xff]  ;;  %s524_s5 = scalar_lea.vmem %s717_s19, 512 }
  0x1c   : > { %283 = vmatprep.mubr.f32.mxu0 %v620_v2  ;;  %295 = vmatprep.mubr.f32.mxu1 %v620_v2  ;;  %p525_p11 = scmp.ne.s32.totalorder %s717_s19, %s524_s5  ;;  %p532_p1 = scmp.lt.s32.totalorder %s530_s9, %s524_s5 }
  0x1e   : > { %p526_p12 = pnand %p525_p11, %p683_p5  ;;  %p533_p2 = por %p532_p1, %p531_p0 }
  0x1f   : > { %462 = vmatmul.mubr.msk.f32.gmra.mrb[2].mxu0 %vm200_vm0, %v185_v5  ;;  %464 = vmatmul.mubr.msk.f32.gmra.mrb[2].mxu1 %vm200_vm0, %v187_v6 }
  0x20   : > { %p527_p13 = pneg %p526_p12 }
  0x22   : > { %p534_p3 = pnand %p533_p2, %p527_p13 }
  0xee   : > { %v279_v9 = vpop.f32.mrb[0].mxu0  ;;  %v291_v10 = vpop.f32.mrb[0].mxu1 }
  0xef   : > { %v280_v11 = vadd.f32 %v459_v7, %v279_v9  ;;  %v292_v12 = vadd.f32 %v459_v7, %v291_v10  ;;  %v281_v13 = vpop.f32.mrb[1].mxu0  ;;  %v293_v14 = vpop.f32.mrb[1].mxu1 }
  0xf0   : > { %v282_v15 = vadd.f32 %v460_v8, %v281_v13  ;;  %v294_v16 = vadd.f32 %v460_v8, %v293_v14 }
  0xf1   : > { %302 = vst [vmem:[%s168_s17] sm:$0xff] %v280_v11  ;;  %304 = vst [vmem:[%s168_s17 + $0x10] sm:$0xff] %v292_v12 }
  0xf2   : > { %vm306_vm1 = vcmp.gt.f32.partialorder %v282_v15, 0.0  ;;  %v310_v17 = vmul.f32 0.2, %v282_v15  ;;  %vm308_vm2 = vcmp.gt.f32.partialorder %v294_v16, 0.0  ;;  %v312_v18 = vmul.f32 0.2, %v294_v16 }
  0xf3   : > { %v285_v19 = vpop.f32.mrb[2].mxu0  ;;  %v297_v20 = vpop.f32.mrb[2].mxu1 }
  0xf4   : > { %v314_v21 = vsel %vm306_vm1, %v282_v15, %v310_v17  ;;  %v316_v22 = vsel %vm308_vm2, %v294_v16, %v312_v18  ;;  %v286_v23 = vadd.f32 %v459_v7, %v285_v19  ;;  %v298_v24 = vadd.f32 %v459_v7, %v297_v20  ;;  %v287_v25 = vpop.f32.mrb[3].mxu0  ;;  %v299_v26 = vpop.f32.mrb[3].mxu1 }
  0xf5   : > { %318 = vst [vmem:[%s714_s24] sm:$0xff] %v314_v21  ;;  %320 = vst [vmem:[%s714_s24 + $0x10] sm:$0xff] %v316_v22  ;;  %v288_v27 = vadd.f32 %v460_v8, %v287_v25  ;;  %v300_v28 = vadd.f32 %v460_v8, %v299_v26 }
  0xf6   : > { %303 = vst [vmem:[%s168_s17 + $0x8] sm:$0xff] %v286_v23  ;;  %305 = vst [vmem:[%s168_s17 + $0x18] sm:$0xff] %v298_v24 }
  0xf7   : > { %vm307_vm3 = vcmp.gt.f32.partialorder %v288_v27, 0.0  ;;  %v311_v29 = vmul.f32 0.2, %v288_v27  ;;  %vm309_vm4 = vcmp.gt.f32.partialorder %v300_v28, 0.0  ;;  %v313_v30 = vmul.f32 0.2, %v300_v28 }
  0xf8   : > { %537 = shalt.err (!%p534_p3)
}
  0xf9   : > { %s538_s10 = scalar_lea.hbm %s722_s27, 512  ;;  %s542_s20 = scalar_lea.hbm %s810_s2, 1024 }
  0xfa   : > { %p539_p4 = scmp.ne.s32.totalorder %s722_s27, %s538_s10  ;;  %p543_p9 = scmp.lt.u32.totalorder %s722_s27, %s810_s2 }
  0xfb   : > { %p544_p10 = scmp.lt.u32.totalorder %s542_s20, %s538_s10  ;;  %p546_p12 = scmp.lt.u32.totalorder %s538_s10, %s722_s27 }
  0xfc   : > { %p540_p7 = pnand %p539_p4, %p683_p5 }
  0xfd   : > { %p545_p11 = por %p544_p10, %p543_p9 }
  0xfe   : > { %p541_p8 = pneg %p540_p7 }
  0xff   : > { %p547_p13 = por %p546_p12, %p545_p11 }
 0x101   : > { %p548_p0 = pnand %p547_p13, %p541_p8 }
 0x103   : > { %551 = shalt.err (!%p548_p0)
}
 0x104   : > { %s622_s28 = smov 128   ;;  %s623_s29 = smov 8   ;;  %v315_v31 = vsel %vm307_vm3, %v288_v27, %v311_v29  ;;  %v317_v32 = vsel %vm309_vm4, %v300_v28, %v313_v30 }
 0x105   : > { %477 = dma.vmem_to_hbm [thread:$0]  (%p683_p5), %s717_s19, 512, %s722_s27, %s323_s4, %s622_s28, %s622_s28, %s623_s29  }
 0x106   : > { %319 = vst [vmem:[%s714_s24 + $0x8] sm:$0xff] %v315_v31  ;;  %321 = vst [vmem:[%s714_s24 + $0x18] sm:$0xff] %v317_v32  ;;  %s328_s5 = scalar_lea.sflag [#allocation5], %s704_s6  ;;  %s552_s7 = scalar_lea.vmem %s726_s25, 512 }
 0x107   : > { %p553_p1 = scmp.ne.s32.totalorder %s726_s25, %s552_s7  ;;  %s624_s8 = smov [#allocation4]  }
 0x108   : > { %s556_s9 = sshll.u32 %s624_s8, 4  ;;  %s557_s9 = int_to_ptr.vmem [resolvable:$false] %s556_s9 }
 0x109   : > { %p554_p2 = pnand %p553_p1, %p683_p5  ;;  %s558_s10 = scalar_lea.vmem %s557_s9, 1024 }
 0x10a   : > { %p559_p4 = scmp.lt.s32.totalorder %s726_s25, %s557_s9  ;;  %p560_p7 = scmp.lt.s32.totalorder %s558_s10, %s552_s7 }
 0x10b   : > { %p555_p3 = pneg %p554_p2 }
 0x10c   : > { %p561_p8 = por %p560_p7, %p559_p4 }
 0x10e   : > { %p562_p9 = pnand %p561_p8, %p555_p3 }
 0x110   : > { %565 = shalt.err (!%p562_p9)
}
 0x111   : > { %s566_s19 = scalar_lea.hbm %s731_s30, 512  ;;  %s570_s4 = scalar_lea.hbm %s811_s3, 1024 }
 0x112   : > { %p567_p10 = scmp.ne.s32.totalorder %s731_s30, %s566_s19  ;;  %p571_p13 = scmp.lt.u32.totalorder %s731_s30, %s811_s3 }
 0x113   : > { %p572_p0 = scmp.lt.u32.totalorder %s570_s4, %s566_s19  ;;  %p574_p2 = scmp.lt.u32.totalorder %s566_s19, %s731_s30 }
 0x114   : > { %p568_p11 = pnand %p567_p10, %p683_p5 }
 0x115   : > { %p573_p1 = por %p572_p0, %p571_p13 }
 0x116   : > { %p569_p12 = pneg %p568_p11 }
 0x117   : > { %p575_p3 = por %p574_p2, %p573_p1 }
 0x119   : > { %p576_p4 = pnand %p575_p3, %p569_p12 }
 0x11b   : > { %579 = shalt.err (!%p576_p4)
}
 0x11c   : > { %478 = dma.vmem_to_hbm [thread:$0]  (%p683_p5), %s726_s25, 512, %s731_s30, %s328_s5, %s622_s28, %s622_s28, %s623_s29  }
 0x11d PF: > { %p488_p7 = scmp.ge.s32.totalorder %s618_s15, 2  ;;  %s372_s20 = sand.u32 1, %s606_s12  }
 0x11e   : > { %s373_s16 = scalar_lea.sflag [#allocation3], %s372_s20 }
 0x11f   : > { %p482_p8 = pnand %p488_p7, %p687_p6 }
 0x121   : > { %597 = dma.done.wait (!%p482_p8), %s373_s16, 512  }
 0x122   : > { %599 = vsyncadd (!%p482_p8), %s373_s16, 4294966784  ;;  %s382_s22 = scalar_lea.sflag [#allocation5], %s372_s20 }
 0x123   : > { %601 = dma.done.wait (!%p482_p8), %s382_s22, 512  }
 0x124   : > { %603 = vsyncadd (!%p482_p8), %s382_s22, 4294966784  ;;  %p17_p5 = scmp.ge.s32.totalorder %s670_s18, 4   ;;  %s814_s12 = smov %s610_s13 }
 0x125   : > { %s815_s13 = smov %s614_s14  ;;  %s816_s14 = smov %s681_s21 }
 0x126   : > { %s817_s15 = smov %s670_s18  ;;  %19 = sbr.rel (!%p17_p5) target bundleno = 5 (0x5), region = 80 }
 0x12d   :  { %387 = vsyncpa [#allocation3], 1 }
 0x12e   :  { %389 = vsyncpa [#allocation3 + $0x1], 1 }
 0x12f   :  { %390 = vsyncpa [#allocation5], 1 }
 0x130   :  { %392 = vsyncpa [#allocation5 + $0x1], 1 }

</bundles_post_ra>
